<compile_context>
chip_gen: v7x
topology: tpu7x:2x2x1
jax: 0.10.0
libtpu: 0.0.40
codegen_flags: <defaults>
</compile_context>

<pallas_src>
import jax
import jax.numpy as jnp
from jax.experimental import pallas as pl
from jax.experimental.pallas import tpu as pltpu

LANE = 128       # TPU lane width
SUBLANE = 8      # TPU sublane granule
HIDDEN = 64      # hidden size from the PyTorch module


def _round_up(x, m):
    return ((x + m - 1) // m) * m


def _mlp_kernel(x_ref, w1_ref, b1_ref, w2_ref, b2_ref, o_ref):
    # x_ref: (tb, S) f32 | w1: (S, Hp) | b1: (1, Hp) | w2: (Hp, A) | b2: (1, A)
    x = x_ref[...]
    h = jnp.dot(x, w1_ref[...],
                preferred_element_type=jnp.float32,
                precision=jax.lax.Precision.HIGHEST)       # MXU, f32
    h = jnp.maximum(h + b1_ref[...], 0.0)                  # VPU, f32
    y = jnp.dot(h, w2_ref[...],
                preferred_element_type=jnp.float32,
                precision=jax.lax.Precision.HIGHEST)       # MXU, f32
    o_ref[...] = y + b2_ref[...]                           # un-padded (tb, A) store


def prepare_params(w1, b1, w2, b2):
    """Pad/layout the weights ONCE (hoisted out of the per-call forward).

    w1:(S,H) b1:(H,) w2:(H,A) b2:(A,)  ->  w1p:(S,Hp) b1p:(1,Hp) w2p:(Hp,A) b2p:(1,A)
    Hidden dim is zero-padded to 128 lanes (exact: relu(0+0)*0 contributes nothing);
    the output dim is left at A so stores are not write-amplified.
    """
    S, H = w1.shape
    A = w2.shape[1]
    Hp = _round_up(H, LANE)
    w1p = jnp.zeros((S, Hp), jnp.float32).at[:, :H].set(w1.astype(jnp.float32))
    b1p = jnp.zeros((1, Hp), jnp.float32).at[:, :H].set(b1.reshape(1, H).astype(jnp.float32))
    w2p = jnp.zeros((Hp, A), jnp.float32).at[:H, :].set(w2.astype(jnp.float32))
    b2p = b2.reshape(1, A).astype(jnp.float32)
    return w1p, b1p, w2p, b2p


def updated_model_forward(state, params, *, tile_b=4096):
    """state: (B, S) f32, params from prepare_params(). Returns (B, A) f32."""
    w1p, b1p, w2p, b2p = params
    B, S = state.shape
    Hp = w1p.shape[1]
    A = w2p.shape[1]

    # Pad the batch only to the 8-sublane granule (<= 7 wasted rows).
    B8 = _round_up(max(B, 1), SUBLANE)
    x = state.astype(jnp.float32)
    if B8 != B:
        x = jnp.zeros((B8, S), jnp.float32).at[:B, :].set(x)

    # Batch tile: large enough to approach the HBM roofline, but capped near half
    # the batch so the grid has >=2 steps and "parallel" shards across v7x's 2 TCs.
    tb = min(tile_b, max(SUBLANE, _round_up(pl.cdiv(B8, 2), SUBLANE)))
    grid = (pl.cdiv(B8, tb),)   # partial last block is masked by Pallas

    # VMEM budget: double-buffered x/out tiles + f32 temporaries + resident weights.
    Sp = _round_up(S, LANE)
    tile_bytes = tb * Sp * 4 + tb * LANE * 4          # x buffer + (lane-padded) out buffer
    interm_bytes = 2 * tb * Hp * 4                    # h and y f32 temporaries
    weight_bytes = (S * Hp + Hp + Hp * LANE + LANE) * 4
    vmem_limit = int(min(32 << 20,
                         max(8 << 20,
                             2 * tile_bytes + interm_bytes + 2 * weight_bytes + (4 << 20))))

    out = pl.pallas_call(
        _mlp_kernel,
        out_shape=jax.ShapeDtypeStruct((B8, A), jnp.float32),
        grid=grid,
        in_specs=[
            pl.BlockSpec((tb, S), lambda i: (i, 0)),      # batch-tiled f32 input
            pl.BlockSpec((S, Hp), lambda i: (0, 0)),      # weights resident across steps
            pl.BlockSpec((1, Hp), lambda i: (0, 0)),
            pl.BlockSpec((Hp, A), lambda i: (0, 0)),
            pl.BlockSpec((1, A), lambda i: (0, 0)),
        ],
        out_specs=pl.BlockSpec((tb, A), lambda i: (i, 0)),  # un-padded output blocks
        compiler_params=pltpu.CompilerParams(
            dimension_semantics=("parallel",),              # megacore sharding on v7x
            vmem_limit_bytes=vmem_limit,
        ),
    )(x, w1p, b1p, w2p, b2p)

    return out[:B, :]


def init_params(key, state_size, action_size, hidden=HIDDEN):
    """Deterministic init mimicking PyTorch Linear's U(-1/sqrt(fan_in), +)."""
    k1, k2, k3, k4 = jax.random.split(key, 4)
    lim1 = 1.0 / jnp.sqrt(jnp.float32(state_size))
    lim2 = 1.0 / jnp.sqrt(jnp.float32(hidden))
    w1 = jax.random.uniform(k1, (state_size, hidden), jnp.float32, -lim1, lim1)
    b1 = jax.random.uniform(k2, (hidden,), jnp.float32, -lim1, lim1)
    w2 = jax.random.uniform(k3, (hidden, action_size), jnp.float32, -lim2, lim2)
    b2 = jax.random.uniform(k4, (action_size,), jnp.float32, -lim2, lim2)
    return w1, b1, w2, b2


if __name__ == "__main__":
    key = jax.random.PRNGKey(0)
    state_size, action_size, batch = 8, 4, 2

    kx, kp = jax.random.split(key)
    state = jax.random.normal(kx, (batch, state_size), jnp.float32)
    w1, b1, w2, b2 = init_params(kp, state_size, action_size)
    params = prepare_params(w1, b1, w2, b2)    # padded once, reused across calls

    out = updated_model_forward(state, params)
    out = jax.block_until_ready(out)

    # f32 reference — kernel uses HIGHEST-precision f32 matmuls, so parity is tight.
    ref = jnp.maximum(state @ w1 + b1, 0.0) @ w2 + b2

    assert out.shape == (batch, action_size)
    assert jnp.allclose(out, ref, atol=1e-3, rtol=1e-3), (out, ref)

    print("KERNEL_OK")
</pallas_src>

<mosaic_0001>
module attributes {stable_mosaic.version = 11 : i64} {
  func.func @_mlp_kernel(%arg0: i32, %arg1: memref<8x8xf32, #tpu.memory_space<vmem>>, %arg2: memref<8x128xf32, #tpu.memory_space<vmem>>, %arg3: memref<1x128xf32, #tpu.memory_space<vmem>>, %arg4: memref<128x4xf32, #tpu.memory_space<vmem>>, %arg5: memref<1x4xf32, #tpu.memory_space<vmem>>, %arg6: memref<8x4xf32, #tpu.memory_space<vmem>>) attributes {dimension_semantics = [#tpu.dimension_semantics<parallel>], iteration_bounds = array<i64: 1>, scalar_prefetch = 0 : i64, scratch_operands = 0 : i64, tpu.core_type = #tpu.core_type<tc>, window_params = [{transform_indices = @transform_0, window_bounds = array<i64: 8, 8>}, {pipeline_mode = #tpu.pipeline_mode<synchronous>, transform_indices = @transform_1, window_bounds = array<i64: 8, 128>}, {pipeline_mode = #tpu.pipeline_mode<synchronous>, transform_indices = @transform_2, window_bounds = array<i64: 1, 128>}, {pipeline_mode = #tpu.pipeline_mode<synchronous>, transform_indices = @transform_3, window_bounds = array<i64: 128, 4>}, {pipeline_mode = #tpu.pipeline_mode<synchronous>, transform_indices = @transform_4, window_bounds = array<i64: 1, 4>}, {transform_indices = @transform_5, window_bounds = array<i64: 8, 4>}]} {
    %c0 = arith.constant 0 : index
    %c0_0 = arith.constant 0 : index
    %0 = vector.load %arg1[%c0, %c0_0] : memref<8x8xf32, #tpu.memory_space<vmem>>, vector<8x8xf32>
    %c0_1 = arith.constant 0 : index
    %c0_2 = arith.constant 0 : index
    %1 = vector.load %arg2[%c0_1, %c0_2] : memref<8x128xf32, #tpu.memory_space<vmem>>, vector<8x128xf32>
    %cst = arith.constant dense<0.000000e+00> : vector<8x128xf32>
    %2 = tpu.matmul %0, %1, %cst {dimension_numbers = #tpu.dot_dimension_numbers<[1], [0], [0], [1], [0, 0, 1, 1], [], []>, precision = #tpu.contract_precision<fp32>} : vector<8x8xf32>, vector<8x128xf32>, vector<8x128xf32> -> vector<8x128xf32>
    %c0_3 = arith.constant 0 : index
    %c0_4 = arith.constant 0 : index
    %3 = vector.load %arg3[%c0_3, %c0_4] : memref<1x128xf32, #tpu.memory_space<vmem>>, vector<1x128xf32>
    %4 = vector.broadcast %3 : vector<1x128xf32> to vector<8x128xf32>
    %5 = arith.addf %2, %4 : vector<8x128xf32>
    %cst_5 = arith.constant 0.000000e+00 : f32
    %6 = vector.broadcast %cst_5 : f32 to vector<8x128xf32>
    %7 = arith.maximumf %5, %6 : vector<8x128xf32>
    %c0_6 = arith.constant 0 : index
    %c0_7 = arith.constant 0 : index
    %8 = vector.load %arg4[%c0_6, %c0_7] : memref<128x4xf32, #tpu.memory_space<vmem>>, vector<128x4xf32>
    %cst_8 = arith.constant dense<0.000000e+00> : vector<8x4xf32>
    %9 = tpu.matmul %7, %8, %cst_8 {dimension_numbers = #tpu.dot_dimension_numbers<[1], [0], [0], [1], [0, 0, 1, 1], [], []>, precision = #tpu.contract_precision<fp32>} : vector<8x128xf32>, vector<128x4xf32>, vector<8x4xf32> -> vector<8x4xf32>
    %c0_9 = arith.constant 0 : index
    %c0_10 = arith.constant 0 : index
    %10 = vector.load %arg5[%c0_9, %c0_10] : memref<1x4xf32, #tpu.memory_space<vmem>>, vector<1x4xf32>
    %11 = vector.broadcast %10 : vector<1x4xf32> to vector<8x4xf32>
    %12 = arith.addf %9, %11 : vector<8x4xf32>
    %c0_11 = arith.constant 0 : index
    %c0_12 = arith.constant 0 : index
    %13 = vector.load %arg6[%c0_11, %c0_12] : memref<8x4xf32, #tpu.memory_space<vmem>>, vector<8x4xf32>
    tpu.vector_store %arg6[%c0_11, %c0_12], %12 {strides = array<i32>} : memref<8x4xf32, #tpu.memory_space<vmem>>, vector<8x4xf32>,
    return
  }
  func.func @transform_0(%arg0: i32) -> (i32, i32) {
    %c0_i32 = arith.constant 0 : i32
    %c0_i32_0 = arith.constant 0 : i32
    return %arg0, %c0_i32 : i32, i32
  }
  func.func @transform_1(%arg0: i32) -> (i32, i32) {
    %c0_i32 = arith.constant 0 : i32
    %c0_i32_0 = arith.constant 0 : i32
    %c0_i32_1 = arith.constant 0 : i32
    return %c0_i32, %c0_i32_0 : i32, i32
  }
  func.func @transform_2(%arg0: i32) -> (i32, i32) {
    %c0_i32 = arith.constant 0 : i32
    %c0_i32_0 = arith.constant 0 : i32
    %c0_i32_1 = arith.constant 0 : i32
    return %c0_i32, %c0_i32_0 : i32, i32
  }
  func.func @transform_3(%arg0: i32) -> (i32, i32) {
    %c0_i32 = arith.constant 0 : i32
    %c0_i32_0 = arith.constant 0 : i32
    %c0_i32_1 = arith.constant 0 : i32
    return %c0_i32, %c0_i32_0 : i32, i32
  }
  func.func @transform_4(%arg0: i32) -> (i32, i32) {
    %c0_i32 = arith.constant 0 : i32
    %c0_i32_0 = arith.constant 0 : i32
    %c0_i32_1 = arith.constant 0 : i32
    return %c0_i32, %c0_i32_0 : i32, i32
  }
  func.func @transform_5(%arg0: i32) -> (i32, i32) {
    %c0_i32 = arith.constant 0 : i32
    %c0_i32_0 = arith.constant 0 : i32
    return %arg0, %c0_i32 : i32, i32
  }
}

</mosaic_0001>

<bundles_post_ra>
// kernel: tpu_custom_call.1
= control target key start
LH: loop header
LB: loop body
LE: loop exit
PB: predicated region body
PF: predicated region fallthrough
CT: control target
= control target key end

     0   :  { %vm29_vm0 = vcmask 64512   ;;  %v1673_v0 = vmov 0.0   ;;  %vm1674_vm1 = vmmov 0   ;;  %v1675_v38 = vmov 0.0|0.0   ;;  %s2032_s1 = inlined_call_operand.vmem [shape: f32[8,128], index: 1, kind: input, shape index: {}]   ;;  %s2033_s0 = inlined_call_operand.vmem [shape: f32[8,8], index: 0, kind: input, shape index: {}]   ;;  %s2034_s3 = inlined_call_operand.vmem [shape: f32[128,4], index: 3, kind: input, shape index: {}]   ;;  %s2035_s2 = inlined_call_operand.vmem [shape: f32[1,128], index: 2, kind: input, shape index: {}]   ;;  %s2036_s4 = inlined_call_operand.vmem [shape: f32[1,4], index: 4, kind: input, shape index: {}]   ;;  %s2037_s5 = inlined_call_operand.vmem [shape: f32[8,4], index: 5, kind: output, shape index: {}]  }
   0x1   :  { %1281 = vmatprep.subr.mxu0 %v1673_v0  ;;  %v21_v1 = vld [vmem:[%s2032_s1] sm:$0xff]  ;;  %1283 = vmatprep.mubr.msk.f32.mxu0 %vm1674_vm1, %v1673_v0  ;;  %v481_v6 = vld [vmem:[%s2034_s3 + $0x8] sm:$0xff]  ;;  %v482_v8 = vld [vmem:[%s2034_s3 + $0x10] sm:$0xff]  ;;  %vm1144_vm2 = vcmask 31744  }
   0x2   :  { %v20_v2 = vld [vmem:[%s2033_s0] sm:$0xff]  ;;  %v34_v4 = vand.u32 4294901760, %v21_v1  ;;  %1266 = vmatprep.subr.mxu1 %v1673_v0  ;;  %1268 = vmatprep.mubr.msk.f32.mxu1 %vm1674_vm1, %v1673_v0  ;;  %v483_v9 = vld [vmem:[%s2034_s3 + $0x18] sm:$0xff]  ;;  %v507_v11 = vand.u32 4294901760, %v481_v6  ;;  %v485_v13 = vld [vmem:[%s2034_s3 + $0x28] sm:$0xff]  ;;  %v510_v16 = vand.u32 4294901760, %v482_v8 }
   0x3   :  { %v480_v3 = vld [vmem:[%s2034_s3] sm:$0xff]  ;;  %v31_v5 = vsel %vm29_vm0, %v20_v2, 0  ;;  %v513_v17 = vand.u32 4294901760, %v483_v9  ;;  %v486_v18 = vld [vmem:[%s2034_s3 + $0x30] sm:$0xff]  ;;  %v519_v22 = vand.u32 4294901760, %v485_v13  ;;  %v487_v23 = vld [vmem:[%s2034_s3 + $0x38] sm:$0xff] }
   0x4   :  { %v504_v7 = vand.u32 4294901760, %v480_v3  ;;  %v99_v10 = vand.u32 4294901760, %v31_v5  ;;  %v484_v12 = vld [vmem:[%s2034_s3 + $0x20] sm:$0xff]  ;;  %v111_v14 = vsub.f32 %v21_v1, %v34_v4  ;;  %1282 = vmatpush3.msra.mxu0 %v34_v4  ;;  %1267 = vmatpush3.msra.mxu1 %v34_v4  ;;  %v1743_v20 = vsub.f32 %v481_v6, %v507_v11  ;;  %v489_v44 = vld [vmem:[%s2034_s3 + $0x48] sm:$0xff]  ;;  %v490_v48 = vld [vmem:[%s2034_s3 + $0x50] sm:$0xff] }
   0x5   :  { %1271 = vmatprep.subr.mxu1 %v1673_v0  ;;  %1286 = vmatprep.subr.mxu0 %v1673_v0  ;;  %v516_v21 = vand.u32 4294901760, %v484_v12  ;;  %v1748_v25 = vsub.f32 %v482_v8, %v510_v16  ;;  %v1750_v26 = vsub.f32 %v483_v9, %v513_v17  ;;  %v522_v27 = vand.u32 4294901760, %v486_v18  ;;  %v488_v43 = vld [vmem:[%s2034_s3 + $0x40] sm:$0xff]  ;;  %v491_v49 = vld [vmem:[%s2034_s3 + $0x58] sm:$0xff]  ;;  %v493_v56 = vld [vmem:[%s2034_s3 + $0x68] sm:$0xff] }
   0x6   :  { %v1736_v15 = vsub.f32 %v480_v3, %v504_v7  ;;  %v100_v19 = vsub.f32 %v31_v5, %v99_v10  ;;  %v112_v24 = vand.u32 4294901760, %v111_v14  ;;  %v1754_v30 = vsub.f32 %v485_v13, %v519_v22  ;;  %v492_v55 = vld [vmem:[%s2034_s3 + $0x60] sm:$0xff]  ;;  %v494_v60 = vld [vmem:[%s2034_s3 + $0x70] sm:$0xff]  ;;  %v495_v61 = vld [vmem:[%s2034_s3 + $0x78] sm:$0xff] }
   0x7   :  { %v1752_v29 = vsub.f32 %v484_v12, %v516_v21  ;;  %v525_v32 = vand.u32 4294901760, %v487_v23  ;;  %v1756_v33 = vsub.f32 %v486_v18, %v522_v27  ;;  %v1772_v39 = vpack.c.bf16 %v507_v11, %v504_v7 }
   0x8   :  { %v101_v28 = vand.u32 4294901760, %v100_v19  ;;  %v113_v31 = vsub.f32 %v111_v14, %v112_v24  ;;  %v1778_v40 = vpack.c.bf16 %v513_v17, %v510_v16  ;;  %v1784_v41 = vpack.c.bf16 %v519_v22, %v516_v21 }
   0x9   :  { %v1760_v36 = vsub.f32 %v487_v23, %v525_v32  ;;  %v1792_v42 = vpack.c.bf16 %v525_v32, %v522_v27  ;;  %v528_v45 = vand.u32 4294901760, %v488_v43  ;;  %v531_v46 = vand.u32 4294901760, %v489_v44 }
   0xa   :  { %1284 = vmatmul.mubr.f32.vlgmr.msra.gmra.mrb[0].mxu0 %v101_v28  ;;  %v102_v34 = vsub.f32 %v100_v19, %v101_v28  ;;  %v114_v35 = vand.u32 4294901760, %v113_v31  ;;  %v534_v52 = vand.u32 4294901760, %v490_v48  ;;  %v537_v53 = vand.u32 4294901760, %v491_v49 }
   0xb   :  { %1287 = vmatpush3.msra.mxu0 %v112_v24  ;;  %1288 = vmatprep.mubr.msk.f32.mxu0 %vm1674_vm1, %v1673_v0  ;;  %v1806_v47 = vpack.c.bf16 %v531_v46, %v528_v45  ;;  %v1814_v50 = vsub.f32 %v488_v43, %v528_v45  ;;  %v1816_v51 = vsub.f32 %v489_v44, %v531_v46  ;;  %v540_v57 = vand.u32 4294901760, %v492_v55 }
   0xc   :  { %v103_v37 = vand.u32 4294901760, %v102_v34  ;;  %1291 = vmatprep.subr.mxu0 %v1673_v0  ;;  %v1822_v54 = vpack.c.bf16 %v537_v53, %v534_v52  ;;  %v543_v58 = vand.u32 4294901760, %v493_v56  ;;  %v546_v62 = vand.u32 4294901760, %v494_v60 }
   0xd   :  { %v549_v63 = vand.u32 4294901760, %v495_v61  ;;  %v1848_v2 = vsub.f32 %v490_v48, %v534_v52  ;;  %v1850_v3 = vsub.f32 %v491_v49, %v537_v53  ;;  %v597_v8 = vand.u32 4294901760, %v1736_v15 }
   0xe   :  { %1269 = vmatmul.mubr.f32.vlgmr.msra.gmra.mrb[0].mxu1 %v103_v37  ;;  %v1834_v59 = vpack.c.bf16 %v543_v58, %v540_v57  ;;  %v1854_v5 = vsub.f32 %v493_v56, %v543_v58  ;;  %v1857_v6 = vsub.f32 %v494_v60, %v546_v62  ;;  %v604_v9 = vand.u32 4294901760, %v1743_v20 }
   0xf   :  { %1272 = vmatpush3.msra.mxu1 %v114_v35  ;;  %1273 = vmatprep.mubr.msk.f32.mxu1 %vm1674_vm1, %v1673_v0  ;;  %v1846_v1 = vpack.c.bf16 %v549_v63, %v546_v62  ;;  %v1859_v7 = vsub.f32 %v495_v61, %v549_v63  ;;  %v598_v11 = vsub.f32 %v1736_v15, %v597_v8  ;;  %v611_v16 = vand.u32 4294901760, %v1748_v25 }
  0x10   :  { %1276 = vmatprep.subr.mxu1 %v1673_v0  ;;  %v605_v12 = vsub.f32 %v1743_v20, %v604_v9  ;;  %v618_v17 = vand.u32 4294901760, %v1750_v26  ;;  %v625_v27 = vand.u32 4294901760, %v1752_v29  ;;  %v632_v28 = vand.u32 4294901760, %v1754_v30 }
  0x11   :  { %v599_v13 = vand.u32 4294901760, %v598_v11  ;;  %v612_v21 = vsub.f32 %v1748_v25, %v611_v16  ;;  %v639_v44 = vand.u32 4294901760, %v1756_v33  ;;  %v646_v45 = vand.u32 4294901760, %v1760_v36 }
  0x12   :  { %1289 = vmatmul.mubr.f32.vlgmr.msra.gmra.mrb[0].mxu0 %v99_v10  ;;  %v619_v22 = vsub.f32 %v1750_v26, %v618_v17  ;;  %v1882_v32 = vpack.c.bf16 %v632_v28, %v625_v27  ;;  %v626_v34 = vsub.f32 %v1752_v29, %v625_v27  ;;  %v633_v35 = vsub.f32 %v1754_v30, %v632_v28 }
  0x13   :  { %1292 = vmatpush3.msra.mxu0 %v34_v4  ;;  %1293 = vmatprep.mubr.msk.f32.mxu0 %vm1674_vm1, %v1673_v0  ;;  %v1852_v4 = vsub.f32 %v492_v55, %v540_v57  ;;  %v613_v23 = vand.u32 4294901760, %v612_v21  ;;  %v1890_v48 = vpack.c.bf16 %v646_v45, %v639_v44  ;;  %v640_v49 = vsub.f32 %v1756_v33, %v639_v44 }
  0x14   :  { %1506 = vmatprep.subr.bf16.mxu0 %v1675_v38  ;;  %v620_v24 = vand.u32 4294901760, %v619_v22  ;;  %v627_v37 = vand.u32 4294901760, %v626_v34  ;;  %v634_v43 = vand.u32 4294901760, %v633_v35  ;;  %v647_v52 = vsub.f32 %v1760_v36, %v646_v45 }
  0x15   :  { %v641_v53 = vand.u32 4294901760, %v640_v49  ;;  %v653_v56 = vand.u32 4294901760, %v1814_v50  ;;  %v660_v57 = vand.u32 4294901760, %v1816_v51  ;;  %v674_v11 = vand.u32 4294901760, %v1850_v3 }
  0x16   :  { %1274 = vmatmul.mubr.f32.vlgmr.msra.gmra.mrb[0].mxu1 %v99_v10  ;;  %v1880_v31 = vpack.c.bf16 %v620_v24, %v613_v23  ;;  %v1888_v46 = vpack.c.bf16 %v634_v43, %v627_v37  ;;  %v648_v55 = vand.u32 4294901760, %v647_v52  ;;  %v681_v22 = vand.u32 4294901760, %v1852_v4 }
  0x17   :  { %1277 = vmatpush3.msra.mxu1 %v111_v14  ;;  %1278 = vmatprep.mubr.msk.f32.mxu1 %vm1674_vm1, %v1673_v0  ;;  %v606_v14 = vand.u32 4294901760, %v605_v12  ;;  %v1898_v60 = vpack.c.bf16 %v660_v57, %v653_v56  ;;  %v654_v61 = vsub.f32 %v1814_v50, %v653_v56  ;;  %v661_v62 = vsub.f32 %v1816_v51, %v660_v57 }
  0x18   :  { %1578 = vmatprep.subr.bf16.mxu1 %v1675_v38  ;;  %v1896_v58 = vpack.c.bf16 %v648_v55, %v641_v53  ;;  %v688_v23 = vand.u32 4294901760, %v1854_v5  ;;  %v682_v28 = vsub.f32 %v1852_v4, %v681_v22  ;;  %v695_v43 = vand.u32 4294901760, %v1857_v6 }
  0x19   :  { %v1872_v18 = vpack.c.bf16 %v606_v14, %v599_v13  ;;  %v655_v63 = vand.u32 4294901760, %v654_v61  ;;  %v702_v44 = vand.u32 4294901760, %v1859_v7  ;;  %v1555_v61 = vpack.c.bf16 %v1743_v20, %v1736_v15 }
  0x1a   :  { %1294 = vmatmul.mubr.f32.vlgmr.msra.gmra.mrb[0].mxu0 %v99_v10  ;;  %v1866_v10 = vpack.c.bf16 %v604_v9, %v597_v8  ;;  %v662_v8 = vand.u32 4294901760, %v661_v62  ;;  %v667_v9 = vand.u32 4294901760, %v1848_v2  ;;  %v1621_v27 = vpack.c.bf16 %v688_v23, %v681_v22 }
  0x1b   :  { %1508 = vmatpush3.bf16.msra.mxu0 %v1772_v39  ;;  %1328 = vmatprep.mubr.msk.f32.mxu0 %vm1674_vm1, %v1673_v0  ;;  %v689_v34 = vsub.f32 %v1854_v5, %v688_v23  ;;  %v683_v35 = vand.u32 4294901760, %v682_v28  ;;  %v1624_v49 = vpack.c.bf16 %v702_v44, %v695_v43  ;;  %v696_v52 = vsub.f32 %v1857_v6, %v695_v43 }
  0x1c   :  { %1509 = vmatprep.subr.bf16.mxu0 %v1675_v38  ;;  %v1904_v12 = vpack.c.bf16 %v662_v8, %v655_v63  ;;  %v1906_v13 = vpack.c.bf16 %v674_v11, %v667_v9  ;;  %v668_v14 = vsub.f32 %v1848_v2, %v667_v9  ;;  %v703_v53 = vsub.f32 %v1859_v7, %v702_v44 }
  0x1d   :  { %v690_v37 = vand.u32 4294901760, %v689_v34  ;;  %v697_v55 = vand.u32 4294901760, %v696_v52  ;;  %v1558_v62 = vpack.c.bf16 %v1750_v26, %v1748_v25  ;;  %v1561_v63 = vpack.c.bf16 %v1754_v30, %v1752_v29  ;;  %v1151_v26 = vld [vmem:[%s2036_s4] ss:$0 sm:$0xff] }
  0x1e   :  { %1279 = vmatmul.mubr.f32.vlgmr.msra.gmra.mrb[0].mxu1 %v100_v19  ;;  %v1874_v19 = vpack.c.bf16 %v618_v17, %v611_v16  ;;  %v675_v16 = vsub.f32 %v1850_v3, %v674_v11  ;;  %v669_v17 = vand.u32 4294901760, %v668_v14  ;;  %v704_v56 = vand.u32 4294901760, %v703_v53 }
  0x1f   :  { %1580 = vmatpush3.bf16.msra.mxu1 %v1772_v39  ;;  %1511 = vmatpush3.bf16.msra.mxu0 %v1778_v40  ;;  %v1549_v45 = vpack.c.bf16 %v690_v37, %v683_v35  ;;  %v1564_v8 = vpack.c.bf16 %v1760_v36, %v1756_v33  ;;  %v1567_v9 = vpack.c.bf16 %v1816_v51, %v1814_v50 }
  0x20   :  { %1581 = vmatprep.subr.bf16.mxu1 %v1675_v38  ;;  %1512 = vmatprep.subr.bf16.mxu0 %v1675_v38  ;;  %v676_v21 = vand.u32 4294901760, %v675_v16  ;;  %v1552_v57 = vpack.c.bf16 %v704_v56, %v697_v55  ;;  %v1570_v11 = vpack.c.bf16 %v1850_v3, %v1848_v2  ;;  %v1573_v14 = vpack.c.bf16 %v1854_v5, %v1852_v4 }
  0x21   :  { %1433 = vmatprep.mubr.msk.f32.mxu1 %vm1674_vm1, %v1673_v0  ;;  %v1576_v15 = vpack.c.bf16 %v1859_v7, %v1857_v6 }
  0x22   :  { %v1546_v24 = vpack.c.bf16 %v676_v21, %v669_v17  ;;  %v1150_v17 = vld [vmem:[%s2035_s2] ss:$0 sm:$0xff] }
  0x23   :  { %1583 = vmatpush3.bf16.msra.mxu1 %v1778_v40  ;;  %1514 = vmatpush3.bf16.msra.mxu0 %v1784_v41 }
  0x24   :  { %1584 = vmatprep.subr.bf16.mxu1 %v1675_v38  ;;  %1515 = vmatprep.subr.bf16.mxu0 %v1675_v38 }
  0x27   :  { %1586 = vmatpush3.bf16.msra.mxu1 %v1784_v41  ;;  %1517 = vmatpush3.bf16.msra.mxu0 %v1792_v42 }
  0x28   :  { %1587 = vmatprep.subr.bf16.mxu1 %v1675_v38  ;;  %1518 = vmatprep.subr.bf16.mxu0 %v1675_v38 }
  0x2b   :  { %1589 = vmatpush3.bf16.msra.mxu1 %v1792_v42  ;;  %1520 = vmatpush3.bf16.msra.mxu0 %v1806_v47 }
  0x2c   :  { %1590 = vmatprep.subr.bf16.mxu1 %v1675_v38  ;;  %1521 = vmatprep.subr.bf16.mxu0 %v1675_v38 }
  0x2f   :  { %1592 = vmatpush3.bf16.msra.mxu1 %v1806_v47  ;;  %1523 = vmatpush3.bf16.msra.mxu0 %v1822_v54 }
  0x30   :  { %1593 = vmatprep.subr.bf16.mxu1 %v1675_v38  ;;  %1524 = vmatprep.subr.bf16.mxu0 %v1675_v38 }
  0x33   :  { %1595 = vmatpush3.bf16.msra.mxu1 %v1822_v54  ;;  %1526 = vmatpush3.bf16.msra.mxu0 %v1834_v59 }
  0x34   :  { %1596 = vmatprep.subr.bf16.mxu1 %v1675_v38  ;;  %1527 = vmatprep.subr.bf16.mxu0 %v1675_v38 }
  0x37   :  { %1598 = vmatpush3.bf16.msra.mxu1 %v1834_v59  ;;  %1529 = vmatpush3.bf16.msra.mxu0 %v1846_v1 }
  0x38   :  { %1599 = vmatprep.subr.bf16.mxu1 %v1675_v38  ;;  %1530 = vmatprep.subr.bf16.mxu0 %v1675_v38 }
  0x3b   :  { %1601 = vmatpush3.bf16.msra.mxu1 %v1846_v1 }
  0x3c   :  { %1602 = vmatprep.subr.bf16.mxu1 %v1675_v38 }
  0xed   :  { %v475_v20 = vpop.f32.mrb[0].mxu0 }
  0xee   :  { %v1295_v16 = vpop.f32.mrb[1].mxu0 }
  0xf1   :  { %v255_v21 = vpop.f32.mrb[0].mxu1 }
  0xf2   :  { %v1650_v22 = vadd.f32 %v1150_v17, %v255_v21  ;;  %v1280_v23 = vpop.f32.mrb[1].mxu1 }
  0xf4   :  { %v1651_v28 = vadd.f32 %v1650_v22, %v475_v20 }
  0xf6   :  { %v479_v34 = vmax.f32 %v1651_v28, 0.0 }
  0xf8   :  { %v1937_v35 = vand.u32 4294901760, %v479_v34 }
  0xfa   :  { %v1940_v37 = vsub.f32 %v479_v34, %v1937_v35 }
  0xfc   :  { %v586_v43 = vand.u32 4294901760, %v1940_v37 }
  0xfe   :  { %1434 = vmatmul.mubr.f32.vlgmr.msra.gmra.mrb[2].mxu1 %v586_v43  ;;  %v587_v44 = vsub.f32 %v1940_v37, %v586_v43 }
  0xff   :  { %1604 = vmatpush3.bf16.msra.mxu1 %v1866_v10  ;;  %1468 = vmatprep.mubr.msk.f32.mxu1 %vm1674_vm1, %v1673_v0 }
 0x100   :  { %1605 = vmatprep.subr.bf16.mxu1 %v1675_v38  ;;  %v588_v52 = vand.u32 4294901760, %v587_v44 }
 0x102   :  { %1329 = vmatmul.mubr.f32.vlgmr.msra.gmra.mrb[2].mxu0 %v588_v52 }
 0x103   :  { %1532 = vmatpush3.bf16.msra.mxu0 %v1872_v18  ;;  %1607 = vmatpush3.bf16.msra.mxu1 %v1874_v19 }
 0x104   :  { %1533 = vmatprep.subr.bf16.mxu0 %v1675_v38  ;;  %1608 = vmatprep.subr.bf16.mxu1 %v1675_v38 }
 0x105   :  { %1363 = vmatprep.mubr.msk.f32.mxu0 %vm1674_vm1, %v1673_v0 }
 0x107   :  { %1535 = vmatpush3.bf16.msra.mxu0 %v1880_v31  ;;  %1610 = vmatpush3.bf16.msra.mxu1 %v1882_v32 }
 0x108   :  { %1536 = vmatprep.subr.bf16.mxu0 %v1675_v38  ;;  %1611 = vmatprep.subr.bf16.mxu1 %v1675_v38 }
 0x10b   :  { %1538 = vmatpush3.bf16.msra.mxu0 %v1888_v46  ;;  %1613 = vmatpush3.bf16.msra.mxu1 %v1890_v48 }
 0x10c   :  { %1539 = vmatprep.subr.bf16.mxu0 %v1675_v38  ;;  %1614 = vmatprep.subr.bf16.mxu1 %v1675_v38 }
 0x10f   :  { %1541 = vmatpush3.bf16.msra.mxu0 %v1896_v58  ;;  %1616 = vmatpush3.bf16.msra.mxu1 %v1898_v60 }
 0x110   :  { %1542 = vmatprep.subr.bf16.mxu0 %v1675_v38  ;;  %1617 = vmatprep.subr.bf16.mxu1 %v1675_v38 }
 0x113   :  { %1544 = vmatpush3.bf16.msra.mxu0 %v1904_v12  ;;  %1619 = vmatpush3.bf16.msra.mxu1 %v1906_v13 }
 0x114   :  { %1545 = vmatprep.subr.bf16.mxu0 %v1675_v38  ;;  %1620 = vmatprep.subr.bf16.mxu1 %v1675_v38 }
 0x117   :  { %1547 = vmatpush3.bf16.msra.mxu0 %v1546_v24  ;;  %1622 = vmatpush3.bf16.msra.mxu1 %v1621_v27 }
 0x118   :  { %1548 = vmatprep.subr.bf16.mxu0 %v1675_v38  ;;  %1623 = vmatprep.subr.bf16.mxu1 %v1675_v38 }
 0x11b   :  { %1550 = vmatpush3.bf16.msra.mxu0 %v1549_v45  ;;  %1625 = vmatpush3.bf16.msra.mxu1 %v1624_v49 }
 0x11c   :  { %1551 = vmatprep.subr.bf16.mxu0 %v1675_v38  ;;  %1626 = vmatprep.subr.bf16.mxu1 %v1675_v38 }
 0x11e   :  { %1469 = vmatmul.mubr.f32.vlgmr.msra.gmra.mrb[2].mxu1 %v1937_v35 }
 0x11f   :  { %1553 = vmatpush3.bf16.msra.mxu0 %v1552_v57  ;;  %1628 = vmatpush3.bf16.msra.mxu1 %v1772_v39 }
 0x120   :  { %1554 = vmatprep.subr.bf16.mxu0 %v1675_v38  ;;  %1629 = vmatprep.subr.bf16.mxu1 %v1675_v38 }
 0x121   :  { %1503 = vmatprep.mubr.msk.f32.mxu1 %vm1674_vm1, %v1673_v0 }
 0x122   :  { %1364 = vmatmul.mubr.f32.vlgmr.msra.gmra.mrb[2].mxu0 %v1937_v35 }
 0x123   :  { %1556 = vmatpush3.bf16.msra.mxu0 %v1555_v61  ;;  %1631 = vmatpush3.bf16.msra.mxu1 %v1778_v40 }
 0x124   :  { %1557 = vmatprep.subr.bf16.mxu0 %v1675_v38  ;;  %1632 = vmatprep.subr.bf16.mxu1 %v1675_v38 }
 0x125   :  { %1398 = vmatprep.mubr.msk.f32.mxu0 %vm1674_vm1, %v1673_v0 }
 0x127   :  { %1559 = vmatpush3.bf16.msra.mxu0 %v1558_v62  ;;  %1634 = vmatpush3.bf16.msra.mxu1 %v1784_v41 }
 0x128   :  { %1560 = vmatprep.subr.bf16.mxu0 %v1675_v38  ;;  %1635 = vmatprep.subr.bf16.mxu1 %v1675_v38 }
 0x12b   :  { %1562 = vmatpush3.bf16.msra.mxu0 %v1561_v63  ;;  %1637 = vmatpush3.bf16.msra.mxu1 %v1792_v42 }
 0x12c   :  { %1563 = vmatprep.subr.bf16.mxu0 %v1675_v38  ;;  %1638 = vmatprep.subr.bf16.mxu1 %v1675_v38 }
 0x12f   :  { %1565 = vmatpush3.bf16.msra.mxu0 %v1564_v8  ;;  %1640 = vmatpush3.bf16.msra.mxu1 %v1806_v47 }
 0x130   :  { %1566 = vmatprep.subr.bf16.mxu0 %v1675_v38  ;;  %1641 = vmatprep.subr.bf16.mxu1 %v1675_v38 }
 0x133   :  { %1568 = vmatpush3.bf16.msra.mxu0 %v1567_v9  ;;  %1643 = vmatpush3.bf16.msra.mxu1 %v1822_v54 }
 0x134   :  { %1569 = vmatprep.subr.bf16.mxu0 %v1675_v38  ;;  %1644 = vmatprep.subr.bf16.mxu1 %v1675_v38 }
 0x137   :  { %1571 = vmatpush3.bf16.msra.mxu0 %v1570_v11  ;;  %1646 = vmatpush3.bf16.msra.mxu1 %v1834_v59 }
 0x138   :  { %1572 = vmatprep.subr.bf16.mxu0 %v1675_v38  ;;  %1647 = vmatprep.subr.bf16.mxu1 %v1675_v38 }
 0x13b   :  { %1574 = vmatpush3.bf16.msra.mxu0 %v1573_v14  ;;  %1649 = vmatpush3.bf16.msra.mxu1 %v1846_v1 }
 0x13c   :  { %1575 = vmatprep.subr.bf16.mxu0 %v1675_v38 }
 0x13e   :  { %1504 = vmatmul.mubr.f32.vlgmr.msra.gmra.mrb[2].mxu1 %v1937_v35 }
 0x13f   :  { %1577 = vmatpush3.bf16.msra.mxu0 %v1576_v15 }
 0x142   :  { %1399 = vmatmul.mubr.f32.vlgmr.msra.gmra.mrb[2].mxu0 %v1940_v37 }
 0x211   :  { %v1140_v0 = vpop.f32.mrb[2].mxu1 }
 0x212   :  { %v1505_v25 = vpop.f32.mrb[3].mxu1 }
 0x215   :  { %v845_v29 = vpop.f32.mrb[2].mxu0 }
 0x216   :  { %v1652_v30 = vadd.f32 %v1151_v26, %v845_v29  ;;  %v1400_v33 = vpop.f32.mrb[3].mxu0 }
 0x218   :  { %v1653_v36 = vadd.f32 %v1652_v30, %v1140_v0 }
 0x21a   :  { %1145 = vst.msk [vmem:[%s2037_s5] sm:$0xff] %vm1144_vm2, %v1653_v36 }

</bundles_post_ra>
